<compile_context>
chip_gen: v6e
topology: v6e:2x2x1
jax: 0.10.0
libtpu: 0.0.40
codegen_flags: <defaults>
</compile_context>

<pallas_src>
import jax
import jax.numpy as jnp
from jax import lax
from jax.experimental import pallas as pl
from jax.experimental.pallas import tpu as pltpu

BN_EPS = 1e-5
LANE = 128


def _round_up(n, m):
    return (n + m - 1) // m * m


def _residual_block_kernel(x_ref, w1_ref, w2_ref, w3_ref, vec_ref, o_ref):
    """One residual block.

    x_ref  : (B, Fp)   input (full batch -- BN stats need the whole batch)
    w*_ref : (Fp, Fp)  linear weights in PyTorch (out, in) layout (NOT transposed)
    vec_ref: (9, Fp)   rows = [b1, g1, be1, b2, g2, be2, b3, g3, be3]
    o_ref  : (B, Fp)   output
    """
    x = x_ref[...].astype(jnp.float32)
    # Full batch lives in this (gridless) block, so batch statistics are exact.
    inv_b = 1.0 / x.shape[0]

    def layer(h, w_ref, li):
        bias = vec_ref[3 * li + 0:3 * li + 1, :]     # (1, Fp)
        gamma = vec_ref[3 * li + 1:3 * li + 2, :]
        beta = vec_ref[3 * li + 2:3 * li + 3, :]

        w = w_ref[...]
        lhs = h.astype(w.dtype) if w.dtype != h.dtype else h
        # Linear: contract h's feature dim against W's in_features dim (axis 1) -> y = h @ W^T + b
        y = lax.dot_general(lhs, w,
                            dimension_numbers=(((1,), (1,)), ((), ())),
                            preferred_element_type=jnp.float32) + bias
        # ReLU
        y = jnp.maximum(y, 0.0)
        # BatchNorm1d, training semantics (batch mean, biased variance), fused one-pass form:
        mean = jnp.sum(y, axis=0, keepdims=True) * inv_b
        ex2 = jnp.sum(y * y, axis=0, keepdims=True) * inv_b
        var = ex2 - mean * mean
        inv_std = lax.rsqrt(var + BN_EPS)
        scale = gamma * inv_std
        shift = beta - mean * scale
        return y * scale + shift

    h = layer(x, w1_ref, 0)
    h = layer(h, w2_ref, 1)
    h = layer(h, w3_ref, 2)

    o_ref[...] = (x + h).astype(o_ref.dtype)


def prepare_params(params, n_features, weight_dtype=jnp.float32):
    """One-time parameter packing/padding. Do NOT call per forward pass."""
    f = n_features
    fp = _round_up(f, LANE)
    prepared = {"n_features": f, "padded": fp}
    vec_rows = []
    for i in (1, 2, 3):
        w = params[f"w{i}"].astype(weight_dtype)             # (F, F), PyTorch (out, in) layout
        if fp != f:
            w = jnp.pad(w, ((0, fp - f), (0, fp - f)))
        prepared[f"w{i}"] = w
        for name in (f"b{i}", f"gamma{i}", f"beta{i}"):
            v = params[name].astype(jnp.float32)
            if fp != f:
                v = jnp.pad(v, (0, fp - f))
            vec_rows.append(v)
    prepared["vecs"] = jnp.stack(vec_rows, axis=0)           # (9, Fp) float32
    return prepared


def residual_block(x, prepared):
    """x: (B, F) float32. prepared: output of prepare_params()."""
    b, f = x.shape
    assert f == prepared["n_features"]
    fp = prepared["padded"]
    xp = jnp.pad(x, ((0, 0), (0, fp - f))) if fp != f else x

    # Explicit VMEM budget: full residency (x, out, 3 weights, packed vectors) + headroom,
    # floored at the 16 MiB default and capped at 64 MiB so it also fits v7x physical VMEM.
    wbytes = sum(int(prepared[f"w{i}"].size) * prepared[f"w{i}"].dtype.itemsize
                 for i in (1, 2, 3))
    actbytes = 2 * b * fp * 4
    vecbytes = int(prepared["vecs"].size) * 4
    vmem_budget = min(max(2 * (wbytes + actbytes + vecbytes) + (4 << 20), 16 << 20), 64 << 20)

    vmem = pl.BlockSpec(memory_space=pltpu.MemorySpace.VMEM)
    out = pl.pallas_call(
        _residual_block_kernel,
        out_shape=jax.ShapeDtypeStruct((b, fp), x.dtype),
        in_specs=[vmem] * 5,
        out_specs=vmem,
        compiler_params=pltpu.CompilerParams(vmem_limit_bytes=int(vmem_budget)),
    )(xp, prepared["w1"], prepared["w2"], prepared["w3"], prepared["vecs"])

    return out[:, :f] if fp != f else out


def init_params(key, n_features):
    """Deterministic init mirroring nn.Linear (uniform +/- 1/sqrt(fan_in)) and BatchNorm1d (gamma=1, beta=0)."""
    params = {}
    bound = 1.0 / float(jnp.sqrt(jnp.float32(n_features)))
    for i in (1, 2, 3):
        key, kw, kb = jax.random.split(key, 3)
        params[f"w{i}"] = jax.random.uniform(kw, (n_features, n_features),
                                             jnp.float32, -bound, bound)
        params[f"b{i}"] = jax.random.uniform(kb, (n_features,),
                                             jnp.float32, -bound, bound)
        params[f"gamma{i}"] = jnp.ones((n_features,), jnp.float32)
        params[f"beta{i}"] = jnp.zeros((n_features,), jnp.float32)
    return params


def _reference(x, params):
    """Pure-JAX reference of the PyTorch forward (training-mode BatchNorm)."""
    h = x
    for i in (1, 2, 3):
        y = h @ params[f"w{i}"].T + params[f"b{i}"]
        y = jnp.maximum(y, 0.0)
        mean = y.mean(axis=0, keepdims=True)
        var = ((y - mean) ** 2).mean(axis=0, keepdims=True)
        h = (y - mean) / jnp.sqrt(var + BN_EPS) * params[f"gamma{i}"] + params[f"beta{i}"]
    return x + h


if __name__ == "__main__":
    B, F = 8, 32
    key = jax.random.PRNGKey(0)
    key, kx = jax.random.split(key)
    x = jax.random.normal(kx, (B, F), jnp.float32)
    params = init_params(key, F)

    prep = prepare_params(params, F)          # one-time packing / padding (no per-call transposes)
    out = jax.block_until_ready(residual_block(x, prep))

    ref = _reference(x, params)
    assert out.shape == (B, F)
    assert jnp.allclose(out, ref, atol=1e-4, rtol=1e-4), "mismatch vs reference"
    print("KERNEL_OK")
</pallas_src>

<mosaic_0001>
module attributes {stable_mosaic.version = 11 : i64} {
  func.func @_residual_block_kernel(%arg0: memref<8x128xf32, #tpu.memory_space<vmem>>, %arg1: memref<128x128xf32, #tpu.memory_space<vmem>>, %arg2: memref<128x128xf32, #tpu.memory_space<vmem>>, %arg3: memref<128x128xf32, #tpu.memory_space<vmem>>, %arg4: memref<9x128xf32, #tpu.memory_space<vmem>>, %arg5: memref<8x128xf32, #tpu.memory_space<vmem>>) attributes {dimension_semantics = [], scalar_prefetch = 0 : i64, scratch_operands = 0 : i64, tpu.core_type = #tpu.core_type<tc>} {
    %c0 = arith.constant 0 : index
    %c0_0 = arith.constant 0 : index
    %0 = vector.load %arg0[%c0, %c0_0] : memref<8x128xf32, #tpu.memory_space<vmem>>, vector<8x128xf32>
    %c0_1 = arith.constant 0 : index
    %c0_2 = arith.constant 0 : index
    %1 = vector.load %arg4[%c0_1, %c0_2] : memref<9x128xf32, #tpu.memory_space<vmem>>, vector<1x128xf32>
    %c1 = arith.constant 1 : index
    %c0_3 = arith.constant 0 : index
    %2 = vector.load %arg4[%c1, %c0_3] : memref<9x128xf32, #tpu.memory_space<vmem>>, vector<1x128xf32>
    %c2 = arith.constant 2 : index
    %c0_4 = arith.constant 0 : index
    %3 = vector.load %arg4[%c2, %c0_4] : memref<9x128xf32, #tpu.memory_space<vmem>>, vector<1x128xf32>
    %c0_5 = arith.constant 0 : index
    %c0_6 = arith.constant 0 : index
    %4 = vector.load %arg1[%c0_5, %c0_6] : memref<128x128xf32, #tpu.memory_space<vmem>>, vector<128x128xf32>
    %cst = arith.constant dense<0.000000e+00> : vector<8x128xf32>
    %5 = tpu.matmul %0, %4, %cst {dimension_numbers = #tpu.dot_dimension_numbers<[1], [1], [0], [0], [0, 0, 1, 0], [], []>} : vector<8x128xf32>, vector<128x128xf32>, vector<8x128xf32> -> vector<8x128xf32>
    %6 = vector.broadcast %1 : vector<1x128xf32> to vector<8x128xf32>
    %7 = arith.addf %5, %6 : vector<8x128xf32>
    %cst_7 = arith.constant 0.000000e+00 : f32
    %8 = vector.broadcast %cst_7 : f32 to vector<8x128xf32>
    %9 = arith.maximumf %7, %8 : vector<8x128xf32>
    %cst_8 = arith.constant dense<0.000000e+00> : vector<128xf32>
    %10 = vector.multi_reduction <add>, %9, %cst_8 [0] : vector<8x128xf32> to vector<128xf32>
    %11 = vector.shape_cast %10 : vector<128xf32> to vector<1x128xf32>
    %cst_9 = arith.constant 1.250000e-01 : f32
    %12 = vector.broadcast %cst_9 : f32 to vector<1x128xf32>
    %13 = arith.mulf %11, %12 : vector<1x128xf32>
    %14 = arith.mulf %9, %9 : vector<8x128xf32>
    %cst_10 = arith.constant dense<0.000000e+00> : vector<128xf32>
    %15 = vector.multi_reduction <add>, %14, %cst_10 [0] : vector<8x128xf32> to vector<128xf32>
    %16 = vector.shape_cast %15 : vector<128xf32> to vector<1x128xf32>
    %cst_11 = arith.constant 1.250000e-01 : f32
    %17 = vector.broadcast %cst_11 : f32 to vector<1x128xf32>
    %18 = arith.mulf %16, %17 : vector<1x128xf32>
    %19 = arith.mulf %13, %13 : vector<1x128xf32>
    %20 = arith.subf %18, %19 : vector<1x128xf32>
    %cst_12 = arith.constant 9.99999974E-6 : f32
    %21 = vector.broadcast %cst_12 : f32 to vector<1x128xf32>
    %22 = arith.addf %20, %21 : vector<1x128xf32>
    %23 = math.rsqrt %22 : vector<1x128xf32>
    %24 = arith.mulf %2, %23 : vector<1x128xf32>
    %25 = arith.mulf %13, %24 : vector<1x128xf32>
    %26 = arith.subf %3, %25 : vector<1x128xf32>
    %27 = vector.broadcast %24 : vector<1x128xf32> to vector<8x128xf32>
    %28 = arith.mulf %9, %27 : vector<8x128xf32>
    %29 = vector.broadcast %26 : vector<1x128xf32> to vector<8x128xf32>
    %30 = arith.addf %28, %29 : vector<8x128xf32>
    %c3 = arith.constant 3 : index
    %c0_13 = arith.constant 0 : index
    %31 = vector.load %arg4[%c3, %c0_13] : memref<9x128xf32, #tpu.memory_space<vmem>>, vector<1x128xf32>
    %c4 = arith.constant 4 : index
    %c0_14 = arith.constant 0 : index
    %32 = vector.load %arg4[%c4, %c0_14] : memref<9x128xf32, #tpu.memory_space<vmem>>, vector<1x128xf32>
    %c5 = arith.constant 5 : index
    %c0_15 = arith.constant 0 : index
    %33 = vector.load %arg4[%c5, %c0_15] : memref<9x128xf32, #tpu.memory_space<vmem>>, vector<1x128xf32>
    %c0_16 = arith.constant 0 : index
    %c0_17 = arith.constant 0 : index
    %34 = vector.load %arg2[%c0_16, %c0_17] : memref<128x128xf32, #tpu.memory_space<vmem>>, vector<128x128xf32>
    %cst_18 = arith.constant dense<0.000000e+00> : vector<8x128xf32>
    %35 = tpu.matmul %30, %34, %cst_18 {dimension_numbers = #tpu.dot_dimension_numbers<[1], [1], [0], [0], [0, 0, 1, 0], [], []>} : vector<8x128xf32>, vector<128x128xf32>, vector<8x128xf32> -> vector<8x128xf32>
    %36 = vector.broadcast %31 : vector<1x128xf32> to vector<8x128xf32>
    %37 = arith.addf %35, %36 : vector<8x128xf32>
    %cst_19 = arith.constant 0.000000e+00 : f32
    %38 = vector.broadcast %cst_19 : f32 to vector<8x128xf32>
    %39 = arith.maximumf %37, %38 : vector<8x128xf32>
    %cst_20 = arith.constant dense<0.000000e+00> : vector<128xf32>
    %40 = vector.multi_reduction <add>, %39, %cst_20 [0] : vector<8x128xf32> to vector<128xf32>
    %41 = vector.shape_cast %40 : vector<128xf32> to vector<1x128xf32>
    %cst_21 = arith.constant 1.250000e-01 : f32
    %42 = vector.broadcast %cst_21 : f32 to vector<1x128xf32>
    %43 = arith.mulf %41, %42 : vector<1x128xf32>
    %44 = arith.mulf %39, %39 : vector<8x128xf32>
    %cst_22 = arith.constant dense<0.000000e+00> : vector<128xf32>
    %45 = vector.multi_reduction <add>, %44, %cst_22 [0] : vector<8x128xf32> to vector<128xf32>
    %46 = vector.shape_cast %45 : vector<128xf32> to vector<1x128xf32>
    %cst_23 = arith.constant 1.250000e-01 : f32
    %47 = vector.broadcast %cst_23 : f32 to vector<1x128xf32>
    %48 = arith.mulf %46, %47 : vector<1x128xf32>
    %49 = arith.mulf %43, %43 : vector<1x128xf32>
    %50 = arith.subf %48, %49 : vector<1x128xf32>
    %cst_24 = arith.constant 9.99999974E-6 : f32
    %51 = vector.broadcast %cst_24 : f32 to vector<1x128xf32>
    %52 = arith.addf %50, %51 : vector<1x128xf32>
    %53 = math.rsqrt %52 : vector<1x128xf32>
    %54 = arith.mulf %32, %53 : vector<1x128xf32>
    %55 = arith.mulf %43, %54 : vector<1x128xf32>
    %56 = arith.subf %33, %55 : vector<1x128xf32>
    %57 = vector.broadcast %54 : vector<1x128xf32> to vector<8x128xf32>
    %58 = arith.mulf %39, %57 : vector<8x128xf32>
    %59 = vector.broadcast %56 : vector<1x128xf32> to vector<8x128xf32>
    %60 = arith.addf %58, %59 : vector<8x128xf32>
    %c6 = arith.constant 6 : index
    %c0_25 = arith.constant 0 : index
    %61 = vector.load %arg4[%c6, %c0_25] : memref<9x128xf32, #tpu.memory_space<vmem>>, vector<1x128xf32>
    %c7 = arith.constant 7 : index
    %c0_26 = arith.constant 0 : index
    %62 = vector.load %arg4[%c7, %c0_26] : memref<9x128xf32, #tpu.memory_space<vmem>>, vector<1x128xf32>
    %c8 = arith.constant 8 : index
    %c0_27 = arith.constant 0 : index
    %63 = vector.load %arg4[%c8, %c0_27] : memref<9x128xf32, #tpu.memory_space<vmem>>, vector<1x128xf32>
    %c0_28 = arith.constant 0 : index
    %c0_29 = arith.constant 0 : index
    %64 = vector.load %arg3[%c0_28, %c0_29] : memref<128x128xf32, #tpu.memory_space<vmem>>, vector<128x128xf32>
    %cst_30 = arith.constant dense<0.000000e+00> : vector<8x128xf32>
    %65 = tpu.matmul %60, %64, %cst_30 {dimension_numbers = #tpu.dot_dimension_numbers<[1], [1], [0], [0], [0, 0, 1, 0], [], []>} : vector<8x128xf32>, vector<128x128xf32>, vector<8x128xf32> -> vector<8x128xf32>
    %66 = vector.broadcast %61 : vector<1x128xf32> to vector<8x128xf32>
    %67 = arith.addf %65, %66 : vector<8x128xf32>
    %cst_31 = arith.constant 0.000000e+00 : f32
    %68 = vector.broadcast %cst_31 : f32 to vector<8x128xf32>
    %69 = arith.maximumf %67, %68 : vector<8x128xf32>
    %cst_32 = arith.constant dense<0.000000e+00> : vector<128xf32>
    %70 = vector.multi_reduction <add>, %69, %cst_32 [0] : vector<8x128xf32> to vector<128xf32>
    %71 = vector.shape_cast %70 : vector<128xf32> to vector<1x128xf32>
    %cst_33 = arith.constant 1.250000e-01 : f32
    %72 = vector.broadcast %cst_33 : f32 to vector<1x128xf32>
    %73 = arith.mulf %71, %72 : vector<1x128xf32>
    %74 = arith.mulf %69, %69 : vector<8x128xf32>
    %cst_34 = arith.constant dense<0.000000e+00> : vector<128xf32>
    %75 = vector.multi_reduction <add>, %74, %cst_34 [0] : vector<8x128xf32> to vector<128xf32>
    %76 = vector.shape_cast %75 : vector<128xf32> to vector<1x128xf32>
    %cst_35 = arith.constant 1.250000e-01 : f32
    %77 = vector.broadcast %cst_35 : f32 to vector<1x128xf32>
    %78 = arith.mulf %76, %77 : vector<1x128xf32>
    %79 = arith.mulf %73, %73 : vector<1x128xf32>
    %80 = arith.subf %78, %79 : vector<1x128xf32>
    %cst_36 = arith.constant 9.99999974E-6 : f32
    %81 = vector.broadcast %cst_36 : f32 to vector<1x128xf32>
    %82 = arith.addf %80, %81 : vector<1x128xf32>
    %83 = math.rsqrt %82 : vector<1x128xf32>
    %84 = arith.mulf %62, %83 : vector<1x128xf32>
    %85 = arith.mulf %73, %84 : vector<1x128xf32>
    %86 = arith.subf %63, %85 : vector<1x128xf32>
    %87 = vector.broadcast %84 : vector<1x128xf32> to vector<8x128xf32>
    %88 = arith.mulf %69, %87 : vector<8x128xf32>
    %89 = vector.broadcast %86 : vector<1x128xf32> to vector<8x128xf32>
    %90 = arith.addf %88, %89 : vector<8x128xf32>
    %91 = arith.addf %0, %90 : vector<8x128xf32>
    %c0_37 = arith.constant 0 : index
    %c0_38 = arith.constant 0 : index
    %92 = vector.load %arg5[%c0_37, %c0_38] : memref<8x128xf32, #tpu.memory_space<vmem>>, vector<8x128xf32>
    tpu.vector_store %arg5[%c0_37, %c0_38], %91 {strides = array<i32>} : memref<8x128xf32, #tpu.memory_space<vmem>>, vector<8x128xf32>,
    return
  }
}

</mosaic_0001>

<bundles_post_ra>
// kernel: tpu_custom_call.1
= control target key start
LH: loop header
LB: loop body
LE: loop exit
PB: predicated region body
PF: predicated region fallthrough
CT: control target
= control target key end

     0   :  { %10 = vsyncpa [#allocation3], 0  ;;  %s924_s0 = inlined_call_operand.hbm [shape: f32[8,128], index: 0, kind: input, shape index: {}]   ;;  %s925_s1 = inlined_call_operand.hbm [shape: f32[128,128], index: 1, kind: input, shape index: {}]   ;;  %s926_s2 = inlined_call_operand.hbm [shape: f32[128,128], index: 2, kind: input, shape index: {}]   ;;  %s927_s3 = inlined_call_operand.hbm [shape: f32[128,128], index: 3, kind: input, shape index: {}]   ;;  %s928_s4 = inlined_call_operand.hbm [shape: f32[9,128], index: 4, kind: input, shape index: {}]   ;;  %s929_s5 = inlined_call_operand.hbm [shape: f32[8,128], index: 5, kind: output, shape index: {}]  }
   0x1   :  { %11 = vsyncpa [#allocation6], 0 }
   0x2   :  { %12 = vsyncpa [#allocation9], 0 }
   0x3   :  { %13 = vsyncpa [#allocation4], 0  ;;  %s788_s18 = smov [#allocation5]  }
   0x4   :  { %s29_s19 = sshll.u32 %s788_s18, 4  ;;  %s30_s19 = int_to_ptr.vmem [resolvable:$true] %s29_s19 }
   0x5   :  { %s668_s20 = scalar_lea.vmem %s30_s19, 2048  ;;  %p673_p1 = scmp.lt.s32.totalorder %s30_s19, %s30_s19 }
   0x6   :  { %p669_p0 = scmp.ne.s32.totalorder %s30_s19, %s668_s20  ;;  %p674_p2 = scmp.lt.s32.totalorder %s668_s20, %s668_s20 }
   0x8   :  { %p675_p3 = por %p674_p2, %p673_p1 }
   0xa   :  { %p676_p4 = pnand %p675_p3, %p669_p0 }
   0xc   :  { %679 = shalt.err (!%p676_p4)
}
   0xd   :  { %s789_s21 = smov 128   ;;  %s790_s22 = smov 8  }
   0xe   :  { %35 = dma.hbm_to_vmem [thread:$0]  %s925_s1, 2048, %s30_s19, [#allocation6], %s789_s21, %s789_s21, %s790_s22  }
   0xf   :  { %s791_s25 = smov [#allocation8]   ;;  %s792_s27 = smov [#allocation2]  }
  0x10   :  { %s53_s26 = sshll.u32 %s791_s25, 4  ;;  %s20_s28 = sshll.u32 %s792_s27, 4  ;;  %s54_s26 = int_to_ptr.vmem [resolvable:$true] %s53_s26  ;;  %s21_s28 = int_to_ptr.vmem [resolvable:$true] %s20_s28 }
  0x11   :  { %s688_s29 = scalar_lea.vmem %s54_s26, 2048  ;;  %p693_p6 = scmp.lt.s32.totalorder %s54_s26, %s54_s26 }
  0x12   :  { %p689_p5 = scmp.ne.s32.totalorder %s54_s26, %s688_s29  ;;  %p694_p7 = scmp.lt.s32.totalorder %s688_s29, %s688_s29 }
  0x14   :  { %p695_p8 = por %p694_p7, %p693_p6 }
  0x16   :  { %p696_p9 = pnand %p695_p8, %p689_p5 }
  0x18   :  { %699 = shalt.err (!%p696_p9)
}
  0x19   :  { %59 = dma.hbm_to_vmem [thread:$0]  %s927_s3, 2048, %s54_s26, [#allocation9], %s789_s21, %s789_s21, %s790_s22  }
  0x1a   :  { %s708_s1 = scalar_lea.vmem %s21_s28, 128  ;;  %p713_p11 = scmp.lt.s32.totalorder %s21_s28, %s21_s28 }
  0x1b   :  { %p709_p10 = scmp.ne.s32.totalorder %s21_s28, %s708_s1  ;;  %p714_p12 = scmp.lt.s32.totalorder %s708_s1, %s708_s1 }
  0x1d   :  { %p715_p13 = por %p714_p12, %p713_p11 }
  0x1f   :  { %p716_p0 = pnand %p715_p13, %p709_p10 }
  0x21   :  { %719 = shalt.err (!%p716_p0)
}
  0x22   :  { %23 = dma.hbm_to_vmem [thread:$0]  %s924_s0, 128, %s21_s28, [#allocation3]  }
  0x23   :  { %s793_s9 = smov [#allocation7]   ;;  %s794_s11 = smov [#allocation10]  }
  0x24   :  { %s41_s10 = sshll.u32 %s793_s9, 4  ;;  %s65_s12 = sshll.u32 %s794_s11, 4  ;;  %s42_s10 = int_to_ptr.vmem [resolvable:$true] %s41_s10  ;;  %s66_s12 = int_to_ptr.vmem [resolvable:$true] %s65_s12 }
  0x25   :  { %s728_s13 = scalar_lea.vmem %s42_s10, 2048  ;;  %p733_p2 = scmp.lt.s32.totalorder %s42_s10, %s42_s10 }
  0x26   :  { %p729_p1 = scmp.ne.s32.totalorder %s42_s10, %s728_s13  ;;  %p734_p3 = scmp.lt.s32.totalorder %s728_s13, %s728_s13 }
  0x28   :  { %p735_p4 = por %p734_p3, %p733_p2 }
  0x2a   :  { %p736_p5 = pnand %p735_p4, %p729_p1 }
  0x2c   :  { %739 = shalt.err (!%p736_p5)
}
  0x2d   :  { %47 = dma.hbm_to_vmem [thread:$0]  %s926_s2, 2048, %s42_s10, [#allocation6], %s789_s21, %s789_s21, %s790_s22  }
  0x2e   :  { %s748_s0 = scalar_lea.vmem %s66_s12, 256  ;;  %p753_p7 = scmp.lt.s32.totalorder %s66_s12, %s66_s12 }
  0x2f   :  { %p749_p6 = scmp.ne.s32.totalorder %s66_s12, %s748_s0  ;;  %p754_p8 = scmp.lt.s32.totalorder %s748_s0, %s748_s0 }
  0x31   :  { %p755_p9 = por %p754_p8, %p753_p7 }
  0x33   :  { %p756_p10 = pnand %p755_p9, %p749_p6 }
  0x35   :  { %759 = shalt.err (!%p756_p10)
}
  0x36   :  { %71 = dma.hbm_to_vmem [thread:$0]  %s928_s4, 256, %s66_s12, [#allocation9], %s789_s21, %s789_s21, %s790_s22  }
  0x37   :  { %780 = dma.done.wait [#allocation3], 128  }
  0x38   :  { %781 = vsyncadd [#allocation3], 4294967168 }
  0x39   :  { %782 = dma.done.wait [#allocation6], 4096  }
  0x3a   :  { %783 = vsyncadd [#allocation6], 4294963200 }
  0x3b   :  { %784 = dma.done.wait [#allocation9], 2304  }
  0x3c   :  { %785 = vsyncadd [#allocation9], 4294964992  ;;  %v795_v0 = vmov 0.0   ;;  %vm796_vm0 = vmmov 0   ;;  %v106_v1 = vld [vmem:[#allocation5 + $0x78] sm:$0xff]  ;;  %v105_v2 = vld [vmem:[#allocation5 + $0x70] sm:$0xff]  ;;  %v204_v61 = vlaneseq }
  0x3d   :  { %539 = vmatprep.subr.mxu0 %v795_v0  ;;  %571 = vmatprep.mubr.msk.f32.mxu0 %vm796_vm0, %v795_v0  ;;  %v232_v3 = vld [vmem:[#allocation7 + $0x78] sm:$0xff]  ;;  %v104_v4 = vld [vmem:[#allocation5 + $0x68] sm:$0xff]  ;;  %v231_v5 = vld [vmem:[#allocation7 + $0x70] sm:$0xff]  ;;  %s797_s2 = smov [#allocation11]  }
  0x3e   :  { %574 = vmatprep.subr.mxu1 %v795_v0  ;;  %606 = vmatprep.mubr.msk.f32.mxu1 %vm796_vm0, %v795_v0  ;;  %v103_v6 = vld [vmem:[#allocation5 + $0x60] sm:$0xff]  ;;  %v230_v7 = vld [vmem:[#allocation7 + $0x68] sm:$0xff]  ;;  %v102_v8 = vld [vmem:[#allocation5 + $0x58] sm:$0xff]  ;;  %v205_v62 = vshrl.u32 %v204_v61, 7  ;;  %s474_s4 = sshll.u32 %s797_s2, 4  ;;  %s475_s4 = int_to_ptr.vmem [resolvable:$true] %s474_s4 }
  0x3f   :  { %540 = vmatpush3.xpose.msra.mxu0 %v106_v1  ;;  %575 = vmatpush3.xpose.msra.mxu1 %v232_v3  ;;  %v229_v9 = vld [vmem:[#allocation7 + $0x60] sm:$0xff]  ;;  %v101_v10 = vld [vmem:[#allocation5 + $0x50] sm:$0xff]  ;;  %v100_v11 = vld [vmem:[#allocation5 + $0x48] sm:$0xff]  ;;  %s760_s17 = scalar_lea.vmem %s475_s4, 128  ;;  %p765_p12 = scmp.lt.s32.totalorder %s475_s4, %s475_s4 }
  0x40   :  { %541 = vmatprep.subr.mxu0 %v795_v0  ;;  %576 = vmatprep.subr.mxu1 %v795_v0  ;;  %v99_v12 = vld [vmem:[#allocation5 + $0x40] sm:$0xff]  ;;  %v98_v13 = vld [vmem:[#allocation5 + $0x38] sm:$0xff]  ;;  %v97_v14 = vld [vmem:[#allocation5 + $0x30] sm:$0xff]  ;;  %v901_v1 = vsub.s32 0, %v205_v62  ;;  %p761_p11 = scmp.ne.s32.totalorder %s475_s4, %s760_s17  ;;  %p766_p13 = scmp.lt.s32.totalorder %s760_s17, %s760_s17 }
  0x41   :  { %v96_v15 = vld [vmem:[#allocation5 + $0x28] sm:$0xff]  ;;  %v95_v16 = vld [vmem:[#allocation5 + $0x20] sm:$0xff]  ;;  %v94_v17 = vld [vmem:[#allocation5 + $0x18] sm:$0xff] }
  0x42   :  { %v93_v18 = vld [vmem:[#allocation5 + $0x10] sm:$0xff]  ;;  %v92_v19 = vld [vmem:[#allocation5 + $0x8] sm:$0xff]  ;;  %v91_v20 = vld [vmem:[#allocation5] sm:$0xff]  ;;  %p767_p0 = por %p766_p13, %p765_p12 }
  0x43   :  { %542 = vmatpush3.xpose.msra.mxu0 %v105_v2  ;;  %577 = vmatpush3.xpose.msra.mxu1 %v231_v5  ;;  %v880_v21 = vld [vmem:[#allocation2] sm:$0xff]  ;;  %v227_v23 = vld [vmem:[#allocation7 + $0x50] sm:$0xff]  ;;  %v226_v24 = vld [vmem:[#allocation7 + $0x48] sm:$0xff] }
  0x44   :  { %543 = vmatprep.subr.mxu0 %v795_v0  ;;  %578 = vmatprep.subr.mxu1 %v795_v0  ;;  %v228_v22 = vld [vmem:[#allocation7 + $0x58] sm:$0xff]  ;;  %v225_v25 = vld [vmem:[#allocation7 + $0x40] sm:$0xff]  ;;  %v223_v27 = vld [vmem:[#allocation7 + $0x30] sm:$0xff]  ;;  %p768_p1 = pnand %p767_p0, %p761_p11 }
  0x45   :  { %v224_v26 = vld [vmem:[#allocation7 + $0x38] sm:$0xff]  ;;  %v222_v28 = vld [vmem:[#allocation7 + $0x28] sm:$0xff]  ;;  %v221_v29 = vld [vmem:[#allocation7 + $0x20] sm:$0xff] }
  0x46   :  { %v220_v30 = vld [vmem:[#allocation7 + $0x18] sm:$0xff]  ;;  %v219_v31 = vld [vmem:[#allocation7 + $0x10] sm:$0xff]  ;;  %v218_v32 = vld [vmem:[#allocation7 + $0x8] sm:$0xff] }
  0x47   :  { %544 = vmatpush3.xpose.msra.mxu0 %v104_v4  ;;  %579 = vmatpush3.xpose.msra.mxu1 %v230_v7  ;;  %v217_v33 = vld [vmem:[#allocation7] sm:$0xff]  ;;  %v358_v34 = vld [vmem:[#allocation8 + $0x78] sm:$0xff]  ;;  %v357_v35 = vld [vmem:[#allocation8 + $0x70] sm:$0xff] }
  0x48   :  { %545 = vmatprep.subr.mxu0 %v795_v0  ;;  %580 = vmatprep.subr.mxu1 %v795_v0  ;;  %v356_v36 = vld [vmem:[#allocation8 + $0x68] sm:$0xff]  ;;  %v355_v37 = vld [vmem:[#allocation8 + $0x60] sm:$0xff] }
  0x49   :  { %v485_v38 = vld [vmem:[#allocation10] ss:$0 sm:$0xff]  ;;  %v89_v63 = vld [vmem:[#allocation10 + $0x1] sm:$0x1]  ;;  %v90_v4 = vld [vmem:[#allocation10 + $0x2] sm:$0x1] }
  0x4b   :  { %546 = vmatpush3.xpose.msra.mxu0 %v103_v6  ;;  %581 = vmatpush3.xpose.msra.mxu1 %v229_v9 }
  0x4c   :  { %547 = vmatprep.subr.mxu0 %v795_v0  ;;  %582 = vmatprep.subr.mxu1 %v795_v0 }
  0x4f   :  { %548 = vmatpush3.xpose.msra.mxu0 %v102_v8  ;;  %583 = vmatpush3.xpose.msra.mxu1 %v228_v22  ;;  %v344_v22 = vld [vmem:[#allocation8 + $0x8] sm:$0xff] }
  0x50   :  { %549 = vmatprep.subr.mxu0 %v795_v0  ;;  %584 = vmatprep.subr.mxu1 %v795_v0 }
  0x53   :  { %550 = vmatpush3.xpose.msra.mxu0 %v101_v10  ;;  %585 = vmatpush3.xpose.msra.mxu1 %v227_v23  ;;  %v343_v23 = vld [vmem:[#allocation8] sm:$0xff] }
  0x54   :  { %551 = vmatprep.subr.mxu0 %v795_v0  ;;  %586 = vmatprep.subr.mxu1 %v795_v0 }
  0x57   :  { %552 = vmatpush3.xpose.msra.mxu0 %v100_v11  ;;  %587 = vmatpush3.xpose.msra.mxu1 %v226_v24  ;;  %v354_v11 = vld [vmem:[#allocation8 + $0x58] sm:$0xff]  ;;  %v486_v24 = vld [vmem:[#allocation10 + $0x3] ss:$0 sm:$0xff] }
  0x58   :  { %553 = vmatprep.subr.mxu0 %v795_v0  ;;  %588 = vmatprep.subr.mxu1 %v795_v0 }
  0x5b   :  { %554 = vmatpush3.xpose.msra.mxu0 %v99_v12  ;;  %589 = vmatpush3.xpose.msra.mxu1 %v225_v25  ;;  %v353_v12 = vld [vmem:[#allocation8 + $0x50] sm:$0xff] }
  0x5c   :  { %555 = vmatprep.subr.mxu0 %v795_v0  ;;  %590 = vmatprep.subr.mxu1 %v795_v0 }
  0x5f   :  { %556 = vmatpush3.xpose.msra.mxu0 %v98_v13  ;;  %591 = vmatpush3.xpose.msra.mxu1 %v224_v26  ;;  %v352_v13 = vld [vmem:[#allocation8 + $0x48] sm:$0xff] }
  0x60   :  { %557 = vmatprep.subr.mxu0 %v795_v0  ;;  %592 = vmatprep.subr.mxu1 %v795_v0 }
  0x63   :  { %558 = vmatpush3.xpose.msra.mxu0 %v97_v14  ;;  %593 = vmatpush3.xpose.msra.mxu1 %v223_v27  ;;  %v351_v14 = vld [vmem:[#allocation8 + $0x40] sm:$0xff] }
  0x64   :  { %559 = vmatprep.subr.mxu0 %v795_v0  ;;  %594 = vmatprep.subr.mxu1 %v795_v0 }
  0x67   :  { %560 = vmatpush3.xpose.msra.mxu0 %v96_v15  ;;  %595 = vmatpush3.xpose.msra.mxu1 %v222_v28  ;;  %v350_v15 = vld [vmem:[#allocation8 + $0x38] sm:$0xff] }
  0x68   :  { %561 = vmatprep.subr.mxu0 %v795_v0  ;;  %596 = vmatprep.subr.mxu1 %v795_v0 }
  0x6b   :  { %562 = vmatpush3.xpose.msra.mxu0 %v95_v16  ;;  %597 = vmatpush3.xpose.msra.mxu1 %v221_v29  ;;  %v349_v16 = vld [vmem:[#allocation8 + $0x30] sm:$0xff] }
  0x6c   :  { %563 = vmatprep.subr.mxu0 %v795_v0  ;;  %598 = vmatprep.subr.mxu1 %v795_v0 }
  0x6f   :  { %564 = vmatpush3.xpose.msra.mxu0 %v94_v17  ;;  %599 = vmatpush3.xpose.msra.mxu1 %v220_v30  ;;  %v348_v17 = vld [vmem:[#allocation8 + $0x28] sm:$0xff] }
  0x70   :  { %565 = vmatprep.subr.mxu0 %v795_v0  ;;  %600 = vmatprep.subr.mxu1 %v795_v0 }
  0x73   :  { %566 = vmatpush3.xpose.msra.mxu0 %v93_v18  ;;  %601 = vmatpush3.xpose.msra.mxu1 %v219_v31  ;;  %v347_v18 = vld [vmem:[#allocation8 + $0x20] sm:$0xff] }
  0x74   :  { %567 = vmatprep.subr.mxu0 %v795_v0  ;;  %602 = vmatprep.subr.mxu1 %v795_v0 }
  0x77   :  { %568 = vmatpush3.xpose.msra.mxu0 %v92_v19  ;;  %603 = vmatpush3.xpose.msra.mxu1 %v218_v32  ;;  %v346_v19 = vld [vmem:[#allocation8 + $0x18] sm:$0xff] }
  0x78   :  { %569 = vmatprep.subr.mxu0 %v795_v0  ;;  %604 = vmatprep.subr.mxu1 %v795_v0 }
  0x7b   :  { %570 = vmatpush3.xpose.msra.mxu0 %v91_v20  ;;  %605 = vmatpush3.xpose.msra.mxu1 %v217_v33  ;;  %v345_v20 = vld [vmem:[#allocation8 + $0x10] sm:$0xff] }
  0x7c   :  { %609 = vmatprep.subr.mxu0 %v795_v0 }
  0x7e   :  { %572 = vmatmul.mubr.f32.vlgmr.msra.gmra.mxu0 %v880_v21 }
  0x7f   :  { %641 = vmatprep.mubr.msk.f32.mxu0 %vm796_vm0, %v795_v0  ;;  %610 = vmatpush3.xpose.msra.mxu0 %v358_v34 }
  0x80   :  { %611 = vmatprep.subr.mxu0 %v795_v0 }
  0x83   :  { %612 = vmatpush3.xpose.msra.mxu0 %v357_v35 }
  0x84   :  { %613 = vmatprep.subr.mxu0 %v795_v0 }
  0x87   :  { %614 = vmatpush3.xpose.msra.mxu0 %v356_v36 }
  0x88   :  { %615 = vmatprep.subr.mxu0 %v795_v0 }
  0x8b   :  { %616 = vmatpush3.xpose.msra.mxu0 %v355_v37 }
  0x8c   :  { %617 = vmatprep.subr.mxu0 %v795_v0 }
  0x8f   :  { %618 = vmatpush3.xpose.msra.mxu0 %v354_v11 }
  0x90   :  { %619 = vmatprep.subr.mxu0 %v795_v0 }
  0x93   :  { %620 = vmatpush3.xpose.msra.mxu0 %v353_v12 }
  0x94   :  { %621 = vmatprep.subr.mxu0 %v795_v0 }
  0x97   :  { %622 = vmatpush3.xpose.msra.mxu0 %v352_v13 }
  0x98   :  { %623 = vmatprep.subr.mxu0 %v795_v0 }
  0x9b   :  { %624 = vmatpush3.xpose.msra.mxu0 %v351_v14 }
  0x9c   :  { %625 = vmatprep.subr.mxu0 %v795_v0 }
  0x9f   :  { %626 = vmatpush3.xpose.msra.mxu0 %v350_v15 }
  0xa0   :  { %627 = vmatprep.subr.mxu0 %v795_v0 }
  0xa3   :  { %628 = vmatpush3.xpose.msra.mxu0 %v349_v16 }
  0xa4   :  { %629 = vmatprep.subr.mxu0 %v795_v0 }
  0xa7   :  { %630 = vmatpush3.xpose.msra.mxu0 %v348_v17  ;;  %v341_v17 = vld [vmem:[#allocation10 + $0x7] sm:$0x1] }
  0xa8   :  { %631 = vmatprep.subr.mxu0 %v795_v0 }
  0xab   :  { %632 = vmatpush3.xpose.msra.mxu0 %v347_v18 }
  0xac   :  { %633 = vmatprep.subr.mxu0 %v795_v0 }
  0xaf   :  { %634 = vmatpush3.xpose.msra.mxu0 %v346_v19 }
  0xb0   :  { %635 = vmatprep.subr.mxu0 %v795_v0 }
  0xb3   :  { %636 = vmatpush3.xpose.msra.mxu0 %v345_v20  ;;  %v342_v20 = vld [vmem:[#allocation10 + $0x8] sm:$0x1] }
  0xb4   :  { %637 = vmatprep.subr.mxu0 %v795_v0 }
  0xb7   :  { %638 = vmatpush3.xpose.msra.mxu0 %v344_v22 }
  0xb8   :  { %639 = vmatprep.subr.mxu0 %v795_v0 }
  0xbb   :  { %640 = vmatpush3.xpose.msra.mxu0 %v343_v23 }
 0x13e   :  { %v177_v39 = vpop.f32.mrf.mxu0 }
 0x13f   :  { %v178_v40 = vadd.f32 %v485_v38, %v177_v39 }
 0x140   :  { %v573_v41 = vpop.f32.mrf.mxu0 }
 0x141   :  { %v181_v42 = vmax.f32 %v178_v40, 0.0 }
 0x143   :  { %v182_v43 = vrot.slane %v181_v42, 4  ;;  %v189_v44 = vmul.f32 %v181_v42, %v181_v42 }
 0x145   :  { %v183_v45 = vadd.f32 %v182_v43, %v181_v42  ;;  %v190_v46 = vrot.slane %v189_v44, 4 }
 0x147   :  { %v184_v47 = vrot.slane %v183_v45, 2  ;;  %v191_v48 = vadd.f32 %v190_v46, %v189_v44  ;;  %v215_v46 = vld [vmem:[#allocation10 + $0x4] sm:$0x1] }
 0x149   :  { %v185_v49 = vadd.f32 %v184_v47, %v183_v45  ;;  %v192_v50 = vrot.slane %v191_v48, 2 }
 0x14b   :  { %v186_v51 = vrot.slane %v185_v49, 1  ;;  %v193_v52 = vadd.f32 %v192_v50, %v191_v48 }
 0x14d   :  { %v194_v53 = vrot.slane %v193_v52, 1  ;;  %v187_v54 = vadd.f32 %v186_v51, %v185_v49  ;;  %v216_v49 = vld [vmem:[#allocation10 + $0x5] sm:$0x1] }
 0x14f   :  { %v195_v55 = vadd.f32 %v194_v53, %v193_v52  ;;  %v188_v56 = vmul.f32 0.125, %v187_v54 }
 0x151   :  { %v196_v57 = vmul.f32 0.125, %v195_v55  ;;  %v197_v58 = vmul.f32 %v188_v56, %v188_v56 }
 0x153   :  { %v198_v59 = vsub.f32 %v196_v57, %v197_v58 }
 0x155   :  { %v199_v60 = vadd.f32 1e-05, %v198_v59 }
 0x157   :  { %654 = vrsqrt.f32 %v199_v60 }
 0x164   :  { %v655_v2 = vpop.eup %654 }
 0x165   :  { %v201_v3 = vmul.f32 %v655_v2, %v89_v63 }
 0x167   :  { %v202_v5 = vmul.f32 %v201_v3, %v188_v56  ;;  %v207_v6 = vrot.slane %v201_v3, %v901_v1  ;;  %v487_v56 = vld [vmem:[#allocation10 + $0x6] ss:$0 sm:$0xff] }
 0x169   :  { %v203_v7 = vsub.f32 %v90_v4, %v202_v5  ;;  %v208_v8 = vmul.f32 %v207_v6, %v181_v42 }
 0x16b   :  { %v212_v9 = vrot.slane %v203_v7, %v901_v1 }
 0x16d   :  { %v213_v10 = vadd.f32 %v212_v9, %v208_v8 }
 0x16f   :  { %607 = vmatmul.mubr.f32.vlgmr.msra.gmra.mxu1 %v213_v10 }
 0x22f   :  { %v303_v25 = vpop.f32.mrf.mxu1 }
 0x230   :  { %v304_v26 = vadd.f32 %v486_v24, %v303_v25 }
 0x231   :  { %v608_v27 = vpop.f32.mrf.mxu1 }
 0x232   :  { %v307_v28 = vmax.f32 %v304_v26, 0.0 }
 0x234   :  { %v308_v29 = vrot.slane %v307_v28, 4  ;;  %v315_v30 = vmul.f32 %v307_v28, %v307_v28 }
 0x236   :  { %v309_v31 = vadd.f32 %v308_v29, %v307_v28  ;;  %v316_v32 = vrot.slane %v315_v30, 4 }
 0x238   :  { %v310_v33 = vrot.slane %v309_v31, 2  ;;  %v317_v34 = vadd.f32 %v316_v32, %v315_v30 }
 0x23a   :  { %v311_v35 = vadd.f32 %v310_v33, %v309_v31  ;;  %v318_v36 = vrot.slane %v317_v34, 2 }
 0x23c   :  { %v312_v37 = vrot.slane %v311_v35, 1  ;;  %v319_v38 = vadd.f32 %v318_v36, %v317_v34 }
 0x23e   :  { %v313_v39 = vadd.f32 %v312_v37, %v311_v35  ;;  %v320_v40 = vrot.slane %v319_v38, 1 }
 0x240   :  { %v314_v0 = vmul.f32 0.125, %v313_v39  ;;  %v321_v41 = vadd.f32 %v320_v40, %v319_v38 }
 0x242   :  { %v322_v42 = vmul.f32 0.125, %v321_v41  ;;  %v323_v43 = vmul.f32 %v314_v0, %v314_v0 }
 0x244   :  { %v324_v44 = vsub.f32 %v322_v42, %v323_v43 }
 0x246   :  { %v325_v45 = vadd.f32 1e-05, %v324_v44 }
 0x248   :  { %656 = vrsqrt.f32 %v325_v45 }
 0x255   :  { %v657_v47 = vpop.eup %656 }
 0x256   :  { %v327_v48 = vmul.f32 %v657_v47, %v215_v46 }
 0x258   :  { %v333_v50 = vrot.slane %v327_v48, %v901_v1  ;;  %v328_v51 = vmul.f32 %v327_v48, %v314_v0 }
 0x25a   :  { %v329_v52 = vsub.f32 %v216_v49, %v328_v51  ;;  %v334_v53 = vmul.f32 %v333_v50, %v307_v28 }
 0x25c   :  { %v338_v54 = vrot.slane %v329_v52, %v901_v1 }
 0x25e   :  { %v339_v55 = vadd.f32 %v338_v54, %v334_v53 }
 0x260   :  { %642 = vmatmul.mubr.f32.vlgmr.msra.gmra.mxu0 %v339_v55 }
 0x320   :  { %v429_v57 = vpop.f32.mrf.mxu0 }
 0x321   :  { %v430_v58 = vadd.f32 %v487_v56, %v429_v57 }
 0x322   :  { %v643_v59 = vpop.f32.mrf.mxu0 }
 0x323   :  { %v433_v60 = vmax.f32 %v430_v58, 0.0 }
 0x325   :  { %v434_v61 = vrot.slane %v433_v60, 4  ;;  %v441_v62 = vmul.f32 %v433_v60, %v433_v60 }
 0x327   :  { %v435_v63 = vadd.f32 %v434_v61, %v433_v60  ;;  %v442_v2 = vrot.slane %v441_v62, 4 }
 0x329   :  { %v436_v3 = vrot.slane %v435_v63, 2  ;;  %v443_v4 = vadd.f32 %v442_v2, %v441_v62 }
 0x32b   :  { %v437_v5 = vadd.f32 %v436_v3, %v435_v63  ;;  %v444_v6 = vrot.slane %v443_v4, 2 }
 0x32d   :  { %v438_v7 = vrot.slane %v437_v5, 1  ;;  %v445_v8 = vadd.f32 %v444_v6, %v443_v4 }
 0x32f   :  { %v439_v9 = vadd.f32 %v438_v7, %v437_v5  ;;  %v446_v10 = vrot.slane %v445_v8, 1 }
 0x331   :  { %v440_v11 = vmul.f32 0.125, %v439_v9  ;;  %v447_v12 = vadd.f32 %v446_v10, %v445_v8 }
 0x333   :  { %v448_v13 = vmul.f32 0.125, %v447_v12  ;;  %v449_v14 = vmul.f32 %v440_v11, %v440_v11 }
 0x335   :  { %v450_v15 = vsub.f32 %v448_v13, %v449_v14 }
 0x337   :  { %v451_v16 = vadd.f32 1e-05, %v450_v15 }
 0x339   :  { %658 = vrsqrt.f32 %v451_v16 }
 0x346   :  { %v659_v18 = vpop.eup %658 }
 0x347   :  { %v453_v19 = vmul.f32 %v659_v18, %v341_v17 }
 0x349   :  { %v454_v22 = vmul.f32 %v453_v19, %v440_v11  ;;  %v459_v23 = vrot.slane %v453_v19, %v901_v1 }
 0x34b   :  { %v455_v24 = vsub.f32 %v342_v20, %v454_v22  ;;  %v460_v25 = vmul.f32 %v459_v23, %v433_v60 }
 0x34d   :  { %v464_v26 = vrot.slane %v455_v24, %v901_v1 }
 0x34f   :  { %v465_v27 = vadd.f32 %v464_v26, %v460_v25 }
 0x351   :  { %v466_v28 = vadd.f32 %v465_v27, %v880_v21 }
 0x353   :  { %467 = vst [vmem:[#allocation11] sm:$0xff] %v466_v28 }
 0x354   :  { %771 = shalt.err (!%p768_p1)
}
 0x355   :  { %477 = dma.vmem_to_hbm [thread:$0]  %s475_s4, 128, %s929_s5, [#allocation4]  }
 0x356   :  { %786 = dma.done.wait [#allocation4], 128  }
 0x357   :  { %787 = vsyncadd [#allocation4], 4294967168 }
 0x358   :  { %481 = vsyncpa [#allocation3], 1 }
 0x359   :  { %482 = vsyncpa [#allocation6], 1 }
 0x35a   :  { %483 = vsyncpa [#allocation9], 1 }
 0x35b   :  { %484 = vsyncpa [#allocation4], 1 }

</bundles_post_ra>
